<compile_context>
chip_gen: v7x
topology: tpu7x:2x2x1
jax: 0.10.0
libtpu: 0.0.40
codegen_flags: <defaults>
</compile_context>

<pallas_src>
import functools

import jax
import jax.numpy as jnp
from jax.experimental import pallas as pl
from jax.experimental.pallas import tpu as pltpu


def _gumbel_connector_kernel(logits_ref, y_ref, *opt_refs, inv_temp, hard,
                             return_max_id):
    # logits_ref: (TM, C) tile in VMEM; class axis (reduction) on lanes.
    x = logits_ref[...].astype(jnp.float32) * jnp.float32(inv_temp)
    row_max = jnp.max(x, axis=-1, keepdims=True)

    idx = None
    iota = None
    if hard or return_max_id:
        c = x.shape[-1]
        iota = jax.lax.broadcasted_iota(jnp.int32, x.shape, 1)
        # First-occurrence argmax on the scaled logits; matches
        # torch.max(softmax(x), dim=1) since softmax is strictly monotone.
        idx = jnp.min(jnp.where(x == row_max, iota, jnp.int32(c)),
                      axis=-1, keepdims=True)

    if hard:
        # Caller discards the soft y in this branch -> emit only the one-hot
        # (zeros.scatter_(1, idx, 1.0)); no exp / normalize needed.
        y_ref[...] = (iota == idx).astype(y_ref.dtype)
    else:
        # Numerically-stable row softmax along the last (lane) axis.
        e = jnp.exp(x - row_max)
        denom = jnp.sum(e, axis=-1, keepdims=True)
        inv = pl.reciprocal(denom, approx=False)  # (TM,1) recip, then VPU mul
        y_ref[...] = (e * inv).astype(y_ref.dtype)

    if return_max_id:
        idx_ref = opt_refs[0]
        idx_ref[...] = idx.astype(idx_ref.dtype)


def _pick_batch_tile(b, c, in_itemsize, y_itemsize, with_idx):
    """Largest sublane-aligned batch tile that stays well inside scoped VMEM."""
    if b <= 8:
        return b  # single block covering the whole (tiny) array
    # Double-buffered resident bytes per batch row: input tile + output tile(s).
    per_row = 2 * (c * in_itemsize + c * y_itemsize + (4 if with_idx else 0))
    budget = 8 << 20  # conservative: fits default scoped VMEM on v5e/v6e/v7x
    tm = budget // max(per_row, 1)
    tm = min(tm, 1024)            # plenty to amortize per-step overhead
    tm = min(tm, -(-b // 2))      # keep >=2 grid steps for megacore sharding
    tm = max(8, (tm // 8) * 8)    # sublane-aligned
    return int(tm)


def _run_kernel(logits, temperature, hard, return_max_id):
    b, c = logits.shape
    if jnp.issubdtype(logits.dtype, jnp.floating):
        # one-hot matches torch's FloatTensor; soft y keeps the caller's dtype
        y_dtype = jnp.float32 if hard else logits.dtype
    else:
        y_dtype = jnp.float32

    tm = _pick_batch_tile(b, c, logits.dtype.itemsize,
                          jnp.dtype(y_dtype).itemsize, return_max_id)
    grid = (pl.cdiv(b, tm),)

    kernel = functools.partial(
        _gumbel_connector_kernel,
        inv_temp=1.0 / float(temperature),
        hard=bool(hard),
        return_max_id=bool(return_max_id),
    )

    out_shape = [jax.ShapeDtypeStruct((b, c), y_dtype)]
    out_specs = [pl.BlockSpec((tm, c), lambda i: (i, 0))]
    if return_max_id:
        # TODO(synk): torch.max returns int64 indices; TPU-friendly int32 here.
        out_shape.append(jax.ShapeDtypeStruct((b, 1), jnp.int32))
        out_specs.append(pl.BlockSpec((tm, 1), lambda i: (i, 0)))

    outs = pl.pallas_call(
        kernel,
        out_shape=tuple(out_shape),
        grid_spec=pltpu.PrefetchScalarGridSpec(
            num_scalar_prefetch=0,
            grid=grid,
            in_specs=[pl.BlockSpec((tm, c), lambda i: (i, 0))],
            out_specs=tuple(out_specs),
        ),
        compiler_params=pltpu.CompilerParams(
            dimension_semantics=("parallel",)),
    )(logits)

    y = outs[0]
    idx = outs[1] if return_max_id else None
    return y, idx


def gumbel_connector_forward(logits, temperature=1.0, hard=False,
                             return_max_id=False):
    """JAX/Pallas equivalent of GumbelConnector.forward.

    logits: [batch, n_class] float array.
    Returns y [batch, n_class] (soft softmax or one-hot), and optionally the
    argmax id [batch, 1] (int32).
    """
    y, idx = _run_kernel(logits, temperature, hard, return_max_id)
    if return_max_id:
        return y, idx
    return y


if __name__ == "__main__":
    key = jax.random.PRNGKey(0)

    # --- small shape consistent with the module: [batch, n_class] ---
    batch, n_class = 2, 32
    logits = jax.random.normal(key, (batch, n_class), dtype=jnp.float32)

    # default forward: soft softmax only
    y = gumbel_connector_forward(logits, temperature=1.0)
    # soft + return_max_id
    y_soft, idx_soft = gumbel_connector_forward(
        logits, temperature=1.0, hard=False, return_max_id=True)
    # hard + return_max_id
    y_hard, idx = gumbel_connector_forward(
        logits, temperature=1.0, hard=True, return_max_id=True)
    # hard only
    y_hard_only = gumbel_connector_forward(logits, temperature=0.8, hard=True)

    jax.block_until_ready((y, y_soft, idx_soft, y_hard, idx, y_hard_only))

    # sanity checks against plain-JAX reference
    y_ref = jax.nn.softmax(logits / 1.0, axis=-1)
    assert jnp.allclose(y, y_ref, atol=1e-6)
    assert jnp.allclose(y_soft, y_ref, atol=1e-6)
    idx_ref = jnp.argmax(y_ref, axis=1).reshape(-1, 1).astype(jnp.int32)
    assert jnp.array_equal(idx_soft, idx_ref)
    assert jnp.array_equal(idx, idx_ref)
    assert jnp.array_equal(y_hard, jax.nn.one_hot(idx_ref[:, 0], n_class))
    assert jnp.array_equal(y_hard_only, jax.nn.one_hot(idx_ref[:, 0], n_class))

    # exercise the multi-step (grid > 1) tiled path as well
    key2 = jax.random.PRNGKey(0)
    logits2 = jax.random.normal(key2, (16, n_class), dtype=jnp.float32)
    y2, idx2 = gumbel_connector_forward(
        logits2, temperature=0.5, hard=False, return_max_id=True)
    jax.block_until_ready((y2, idx2))
    y2_ref = jax.nn.softmax(logits2 / 0.5, axis=-1)
    idx2_ref = jnp.argmax(y2_ref, axis=1).reshape(-1, 1).astype(jnp.int32)
    assert jnp.allclose(y2, y2_ref, atol=1e-6)
    assert jnp.array_equal(idx2, idx2_ref)

    print("KERNEL_OK")
</pallas_src>

<mosaic_0001>
module attributes {stable_mosaic.version = 11 : i64} {
  func.func @_gumbel_connector_kernel(%arg0: i32, %arg1: memref<2x32xf32, #tpu.memory_space<vmem>>, %arg2: memref<2x32xf32, #tpu.memory_space<vmem>>) attributes {dimension_semantics = [#tpu.dimension_semantics<parallel>], iteration_bounds = array<i64: 1>, scalar_prefetch = 0 : i64, scratch_operands = 0 : i64, tpu.core_type = #tpu.core_type<tc>, window_params = [{transform_indices = @transform_0, window_bounds = array<i64: 2, 32>}, {transform_indices = @transform_1, window_bounds = array<i64: 2, 32>}]} {
    %c0 = arith.constant 0 : index
    %c0_0 = arith.constant 0 : index
    %0 = vector.load %arg1[%c0, %c0_0] : memref<2x32xf32, #tpu.memory_space<vmem>>, vector<2x32xf32>
    %cst = arith.constant 1.000000e+00 : f32
    %1 = vector.broadcast %cst : f32 to vector<2x32xf32>
    %2 = arith.mulf %0, %1 : vector<2x32xf32>
    %cst_1 = arith.constant dense<0xFF800000> : vector<2xf32>
    %3 = vector.multi_reduction <maximumf>, %2, %cst_1 [1] : vector<2x32xf32> to vector<2xf32>
    %4 = vector.shape_cast %3 : vector<2xf32> to vector<2x1xf32>
    %5 = vector.broadcast %4 : vector<2x1xf32> to vector<2x32xf32>
    %6 = arith.subf %2, %5 : vector<2x32xf32>
    %7 = math.exp %6 : vector<2x32xf32>
    %cst_2 = arith.constant dense<0.000000e+00> : vector<2xf32>
    %8 = vector.multi_reduction <add>, %7, %cst_2 [1] : vector<2x32xf32> to vector<2xf32>
    %9 = vector.shape_cast %8 : vector<2xf32> to vector<2x1xf32>
    %10 = tpu.reciprocal %9 : vector<2x1xf32> -> vector<2x1xf32>
    %11 = vector.broadcast %10 : vector<2x1xf32> to vector<2x32xf32>
    %12 = arith.mulf %7, %11 : vector<2x32xf32>
    %c0_3 = arith.constant 0 : index
    %c0_4 = arith.constant 0 : index
    %13 = vector.load %arg2[%c0_3, %c0_4] : memref<2x32xf32, #tpu.memory_space<vmem>>, vector<2x32xf32>
    tpu.vector_store %arg2[%c0_3, %c0_4], %12 {strides = array<i32>} : memref<2x32xf32, #tpu.memory_space<vmem>>, vector<2x32xf32>,
    return
  }
  func.func @transform_0(%arg0: i32) -> (i32, i32) {
    %c0_i32 = arith.constant 0 : i32
    %c0_i32_0 = arith.constant 0 : i32
    return %arg0, %c0_i32 : i32, i32
  }
  func.func @transform_1(%arg0: i32) -> (i32, i32) {
    %c0_i32 = arith.constant 0 : i32
    %c0_i32_0 = arith.constant 0 : i32
    return %arg0, %c0_i32 : i32, i32
  }
}

</mosaic_0001>

<bundles_post_ra>
// kernel: tpu_custom_call.1
= control target key start
LH: loop header
LB: loop body
LE: loop exit
PB: predicated region body
PF: predicated region fallthrough
CT: control target
= control target key end

     0   :  { %6 = vsyncpa [#allocation3], 0  ;;  %s143_s0 = inlined_call_operand.hbm [shape: f32[2,32], index: 0, kind: input, shape index: {}]   ;;  %s144_s1 = inlined_call_operand.hbm [shape: f32[2,32], index: 1, kind: output, shape index: {}]  }
   0x1   :  { %7 = vsyncpa [#allocation4], 0  ;;  %s104_s6 = smov [#allocation2]   ;;  %s56_s10 = scalar_lea.hbm %s143_s0, 32 }
   0x2   :  { %s14_s7 = sshll.u32 %s104_s6, 4  ;;  %p57_p0 = scmp.ne.s32.totalorder %s143_s0, %s56_s10  ;;  %s15_s7 = int_to_ptr.vmem [resolvable:$true] %s14_s7 }
   0x3   :  { %p60_p1 = scmp.lt.u32.totalorder %s56_s10, %s143_s0 }
   0x5   :  { %p62_p2 = pnand %p60_p1, %p57_p0 }
   0x7   :  { %65 = shalt.err (!%p62_p2)
}
   0x8   :  { %s66_s15 = scalar_lea.vmem %s15_s7, 32  ;;  %p71_p4 = scmp.lt.s32.totalorder %s15_s7, %s15_s7 }
   0x9   :  { %p67_p3 = scmp.ne.s32.totalorder %s15_s7, %s66_s15  ;;  %p72_p5 = scmp.lt.s32.totalorder %s66_s15, %s66_s15 }
   0xb   :  { %p73_p6 = por %p72_p5, %p71_p4 }
   0xd   :  { %p74_p7 = pnand %p73_p6, %p67_p3 }
   0xf   :  { %77 = shalt.err (!%p74_p7)
}
  0x10   :  { %17 = dma.hbm_to_vmem [thread:$0]  %s143_s0, 32, %s15_s7, [#allocation3]  }
  0x11   :  { %100 = dma.done.wait [#allocation3], 32  }
  0x12   :  { %101 = vsyncadd [#allocation3], 4294967264  ;;  %vm22_vm0 = vcmask 254976   ;;  %v21_v0 = vld [vmem:[#allocation2] sm:$0x3]  ;;  %s105_s18 = smov [#allocation5]  }
  0x13   :  { %v23_v1 = vsel %vm22_vm0, %v21_v0, -inf  ;;  %s41_s19 = sshll.u32 %s105_s18, 4  ;;  %s42_s19 = int_to_ptr.vmem [resolvable:$true] %s41_s19 }
  0x14   :  { %24 = vmax.xlane.f32.xlu0 %v23_v1  ;;  %s78_s0 = scalar_lea.vmem %s42_s19, 32  ;;  %p83_p9 = scmp.lt.s32.totalorder %s42_s19, %s42_s19 }
  0x15   :  { %p79_p8 = scmp.ne.s32.totalorder %s42_s19, %s78_s0  ;;  %p84_p10 = scmp.lt.s32.totalorder %s78_s0, %s78_s0 }
  0x17   :  { %p85_p11 = por %p84_p10, %p83_p9 }
  0x19   :  { %p86_p12 = pnand %p85_p11, %p79_p8 }
  0xa1   :  { %v25_v2 = vpop.xlane.xlu0 %24 }
  0xa2   :  { %v26_v3 = vsub.f32 %v21_v0, %v25_v2 }
  0xa4   :  { %v27_v4 = vmul.f32 1.442695, %v26_v3 }
  0xa6   :  { %52 = vpow2.f32 %v27_v4 }
  0xb0   :  { %v53_v5 = vpop.eup %52 }
  0xb1   :  { %v29_v6 = vsel %vm22_vm0, %v53_v5, 0.0 }
  0xb2   :  { %30 = vadd.xlane.f32.xlu0 %v29_v6 }
 0x13f   :  { %v31_v7 = vpop.xlane.xlu0 %30 }
 0x140   :  { %54 = vrcp.f32 %v31_v7 }
 0x14a   :  { %v55_v8 = vpop.eup %54 }
 0x14b   :  { %v33_v9 = vmul.f32 %v55_v8, %v53_v5 }
 0x14d   :  { %34 = vst.msk [vmem:[#allocation5] sm:$0x3] %vm22_vm0, %v33_v9 }
 0x14e   :  { %89 = shalt.err (!%p86_p12)
}
 0x14f   :  { %s90_s22 = scalar_lea.hbm %s144_s1, 32 }
 0x150   :  { %p91_p13 = scmp.ne.s32.totalorder %s144_s1, %s90_s22  ;;  %p94_p0 = scmp.lt.u32.totalorder %s90_s22, %s144_s1 }
 0x152   :  { %p96_p1 = pnand %p94_p0, %p91_p13 }
 0x154   :  { %99 = shalt.err (!%p96_p1)
}
 0x155   :  { %44 = dma.vmem_to_hbm [thread:$0]  %s42_s19, 32, %s144_s1, [#allocation4]  }
 0x156   :  { %102 = dma.done.wait [#allocation4], 32  }
 0x157   :  { %103 = vsyncadd [#allocation4], 4294967264 }
 0x158   :  { %48 = vsyncpa [#allocation3], 1 }
 0x159   :  { %49 = vsyncpa [#allocation4], 1 }

</bundles_post_ra>
